<compile_context>
chip_gen: v7x
topology: tpu7x:2x2x1
jax: 0.10.0
libtpu: 0.0.40
codegen_flags: <defaults>
</compile_context>

<pallas_src>
import functools
import math

import jax
import jax.numpy as jnp
from jax.experimental import pallas as pl
from jax.experimental.pallas import tpu as pltpu


def _mha_kernel(x_ref, wq_ref, wk_ref, wv_ref, bq_ref, bk_ref, bv_ref,
                wo_ref, bo_ref, o_ref, *, num_heads, head_dim, seq_len):
    # Block shapes seen by the kernel:
    #   x_ref : (Bblk, S, D)         wq/wk/wv_ref : (D, E)    bq/bk/bv_ref : (1, E)
    #   wo_ref: (E, E)               bo_ref : (1, E)          o_ref : (Bblk, S, E)
    bblk = x_ref.shape[0]
    D = x_ref.shape[-1]
    E = o_ref.shape[-1]
    n = bblk * seq_len
    cdt = x_ref.dtype                      # compute dtype feeding the MXU

    x2 = x_ref[...].reshape(n, D)          # leading-dim merge only (free)

    # Hoisted lane-dense projections over all Bblk*S rows (output width E, not
    # hd).  1/sqrt(hd) and the q bias were pre-folded into wq/bq on the host.
    q = (jnp.dot(x2, wq_ref[...], preferred_element_type=jnp.float32)
         + bq_ref[...]).astype(cdt)
    k = (jnp.dot(x2, wk_ref[...], preferred_element_type=jnp.float32)
         + bk_ref[...]).astype(cdt)
    v = (jnp.dot(x2, wv_ref[...], preferred_element_type=jnp.float32)
         + bv_ref[...]).astype(cdt)

    # Per-head S x S attention (static, compile-time unrolled head loop).
    # q @ k^T contracts the LAST dims -> no materialized transpose.  Softmax
    # stats in f32; normalization deferred to the (S, hd) PV result (EUP
    # reciprocal, off the VALU).
    vals = []
    for h in range(num_heads):
        sl = slice(h * head_dim, (h + 1) * head_dim)
        qh = q[:, sl].reshape(bblk, seq_len, head_dim)
        kh = k[:, sl].reshape(bblk, seq_len, head_dim)
        vh = v[:, sl].reshape(bblk, seq_len, head_dim)
        logits = jnp.einsum("bqd,bkd->bqk", qh, kh,
                            preferred_element_type=jnp.float32)   # (Bblk,S,S)
        m = jnp.max(logits, axis=-1, keepdims=True)
        p = jnp.exp(logits - m)
        denom = jnp.sum(p, axis=-1, keepdims=True)
        pv = jnp.einsum("bqk,bkd->bqd", p.astype(cdt), vh,
                        preferred_element_type=jnp.float32)       # (Bblk,S,hd)
        vals.append((pv * pl.reciprocal(denom, approx=True))
                    .reshape(n, head_dim))

    # Head concat, then ONE lane-dense output projection (n, E) @ (E, E).
    vals2 = jnp.concatenate(vals, axis=-1).astype(cdt)            # (n, E)
    out = (jnp.dot(vals2, wo_ref[...], preferred_element_type=jnp.float32)
           + bo_ref[...])
    o_ref[...] = out.reshape(bblk, seq_len, E).astype(o_ref.dtype)


def multihead_attention(x, w_qkv, b_qkv, w_o, b_o, *, num_heads,
                        block_b=None, vmem_limit_bytes=32 * 1024 * 1024):
    """Fused multi-head attention forward.

    x:      [B, S, D]   (its dtype is the compute dtype; bf16 supported)
    w_qkv:  [D, 3E]     (= qkv_proj.weight.T, module's packed per-head layout)
    b_qkv:  [3E]
    w_o:    [E, E]      (= o_proj.weight.T)
    b_o:    [E]
    returns [B, S, E]  (dtype of x)
    """
    B, S, D = x.shape
    three_E = w_qkv.shape[1]
    E = three_E // 3
    assert E % num_heads == 0
    hd = E // num_heads

    if block_b is None:
        # >= 2 steps on the parallel batch axis when possible so v7x can shard
        # the grid across both TensorCores; otherwise fall back to 1.
        if B >= 2 and B % (B // 2) == 0:
            block_b = B // 2
        else:
            block_b = 1 if B >= 2 else B
    assert B % block_b == 0

    cdt = x.dtype
    scale = 1.0 / math.sqrt(hd)

    # Host-side repack: the module reshapes qkv to (B, S, H, 3*hd) and chunks,
    # so column block [h*3hd : h*3hd+hd] of w_qkv is q of head h, etc.
    # Repack into head-major (D, E) blocks and fold the softmax scale (and the
    # q bias) into Wq/bq; cast operands to the compute dtype.
    w3 = w_qkv.reshape(D, num_heads, 3, hd)
    wq = (w3[:, :, 0, :].reshape(D, E) * scale).astype(cdt)
    wk = w3[:, :, 1, :].reshape(D, E).astype(cdt)
    wv = w3[:, :, 2, :].reshape(D, E).astype(cdt)
    b3 = b_qkv.reshape(num_heads, 3, hd)
    bq = (b3[:, 0, :].reshape(1, E) * scale).astype(cdt)
    bk = b3[:, 1, :].reshape(1, E).astype(cdt)
    bv = b3[:, 2, :].reshape(1, E).astype(cdt)
    wo = w_o.astype(cdt)
    bo = b_o.reshape(1, E).astype(jnp.float32)   # added to the f32 accumulator

    kernel = functools.partial(_mha_kernel, num_heads=num_heads,
                               head_dim=hd, seq_len=S)

    grid = (B // block_b,)                       # batch blocks only (parallel)
    batch_map = lambda b: (b, 0, 0)
    full2d = lambda b: (0, 0)

    return pl.pallas_call(
        kernel,
        out_shape=jax.ShapeDtypeStruct((B, S, E), x.dtype),
        grid_spec=pltpu.PrefetchScalarGridSpec(
            num_scalar_prefetch=0,
            grid=grid,
            in_specs=[
                pl.BlockSpec((block_b, S, D), batch_map),   # x
                pl.BlockSpec((D, E), full2d),               # Wq (scaled)
                pl.BlockSpec((D, E), full2d),               # Wk
                pl.BlockSpec((D, E), full2d),               # Wv
                pl.BlockSpec((1, E), full2d),               # bq (scaled)
                pl.BlockSpec((1, E), full2d),               # bk
                pl.BlockSpec((1, E), full2d),               # bv
                pl.BlockSpec((E, E), full2d),               # Wo
                pl.BlockSpec((1, E), full2d),               # bo
            ],
            out_specs=pl.BlockSpec((block_b, S, E), batch_map),
        ),
        compiler_params=pltpu.CompilerParams(
            dimension_semantics=("parallel",),
            vmem_limit_bytes=vmem_limit_bytes),
    )(x, wq, wk, wv, bq, bk, bv, wo, bo)


def _xavier_uniform(key, shape):
    # PyTorch nn.init.xavier_uniform_ for a Linear weight of shape (out, in).
    fan_out, fan_in = shape
    limit = math.sqrt(6.0 / (fan_in + fan_out))
    return jax.random.uniform(key, shape, jnp.float32, -limit, limit)


def _reference(x, w_qkv, b_qkv, w_o, b_o, num_heads):
    # Pure-JAX reference mirroring the PyTorch module forward exactly (f32).
    B, S, D = x.shape
    E = w_o.shape[0]
    hd = E // num_heads
    qkv = x @ w_qkv + b_qkv                                   # (B, S, 3E)
    qkv = qkv.reshape(B, S, num_heads, 3 * hd).transpose(0, 2, 1, 3)
    q, k, v = jnp.split(qkv, 3, axis=-1)
    logits = jnp.einsum("bhqd,bhkd->bhqk", q, k) / math.sqrt(hd)
    attn = jax.nn.softmax(logits, axis=-1)
    vals = jnp.einsum("bhqk,bhkd->bhqd", attn, v)
    vals = vals.transpose(0, 2, 1, 3).reshape(B, S, E)
    return vals @ w_o + b_o


if __name__ == "__main__":
    # Small shapes: batch=2, seq=8, input_dim=32, embed_dim=32, heads=4 (hd=8)
    B, S, input_dim, embed_dim, num_heads = 2, 8, 32, 32, 4

    key = jax.random.PRNGKey(0)
    k_x, k_wqkv, k_wo, k_bqkv, k_bo = jax.random.split(key, 5)

    x = jax.random.normal(k_x, (B, S, input_dim), jnp.float32)

    # PyTorch stores Linear weights as (out, in); init that way, then transpose
    # so the kernel computes x @ W (matching y = x @ W.T + b).
    w_qkv_torch = _xavier_uniform(k_wqkv, (3 * embed_dim, input_dim))
    w_o_torch = _xavier_uniform(k_wo, (embed_dim, embed_dim))
    # The module initializes biases to 0; use small non-zero biases here so the
    # bias path is actually exercised (semantics are identical).
    b_qkv = 0.1 * jax.random.normal(k_bqkv, (3 * embed_dim,), jnp.float32)
    b_o = 0.1 * jax.random.normal(k_bo, (embed_dim,), jnp.float32)

    w_qkv = w_qkv_torch.T   # (input_dim, 3*embed_dim)
    w_o = w_o_torch.T       # (embed_dim, embed_dim)

    ref = _reference(x, w_qkv, b_qkv, w_o, b_o, num_heads)

    # f32 path: tight parity with the PyTorch module.
    out_f32 = multihead_attention(x, w_qkv, b_qkv, w_o, b_o,
                                  num_heads=num_heads)
    out_f32 = jax.block_until_ready(out_f32)
    assert out_f32.shape == (B, S, embed_dim)
    err32 = float(jnp.max(jnp.abs(out_f32 - ref)))
    assert jnp.allclose(out_f32, ref, atol=2e-3, rtol=2e-3), \
        f"f32 mismatch vs reference (max abs err {err32})"

    # bf16 path: native MXU dtype with f32 accumulation / f32 softmax stats.
    out_bf16 = multihead_attention(x.astype(jnp.bfloat16), w_qkv, b_qkv,
                                   w_o, b_o, num_heads=num_heads)
    out_bf16 = jax.block_until_ready(out_bf16).astype(jnp.float32)
    err16 = float(jnp.max(jnp.abs(out_bf16 - ref)))
    assert jnp.allclose(out_bf16, ref, atol=5e-2, rtol=5e-2), \
        f"bf16 mismatch vs reference (max abs err {err16})"

    print("KERNEL_OK")
</pallas_src>

<mosaic_0001>
module attributes {stable_mosaic.version = 11 : i64} {
  func.func @_mha_kernel(%arg0: i32, %arg1: memref<1x8x32xf32, #tpu.memory_space<vmem>>, %arg2: memref<32x32xf32, #tpu.memory_space<vmem>>, %arg3: memref<32x32xf32, #tpu.memory_space<vmem>>, %arg4: memref<32x32xf32, #tpu.memory_space<vmem>>, %arg5: memref<1x32xf32, #tpu.memory_space<vmem>>, %arg6: memref<1x32xf32, #tpu.memory_space<vmem>>, %arg7: memref<1x32xf32, #tpu.memory_space<vmem>>, %arg8: memref<32x32xf32, #tpu.memory_space<vmem>>, %arg9: memref<1x32xf32, #tpu.memory_space<vmem>>, %arg10: memref<1x8x32xf32, #tpu.memory_space<vmem>>) attributes {dimension_semantics = [#tpu.dimension_semantics<parallel>], iteration_bounds = array<i64: 2>, scalar_prefetch = 0 : i64, scratch_operands = 0 : i64, tpu.core_type = #tpu.core_type<tc>, window_params = [{transform_indices = @transform_0, window_bounds = array<i64: 1, 8, 32>}, {pipeline_mode = #tpu.pipeline_mode<synchronous>, transform_indices = @transform_1, window_bounds = array<i64: 32, 32>}, {pipeline_mode = #tpu.pipeline_mode<synchronous>, transform_indices = @transform_2, window_bounds = array<i64: 32, 32>}, {pipeline_mode = #tpu.pipeline_mode<synchronous>, transform_indices = @transform_3, window_bounds = array<i64: 32, 32>}, {pipeline_mode = #tpu.pipeline_mode<synchronous>, transform_indices = @transform_4, window_bounds = array<i64: 1, 32>}, {pipeline_mode = #tpu.pipeline_mode<synchronous>, transform_indices = @transform_5, window_bounds = array<i64: 1, 32>}, {pipeline_mode = #tpu.pipeline_mode<synchronous>, transform_indices = @transform_6, window_bounds = array<i64: 1, 32>}, {pipeline_mode = #tpu.pipeline_mode<synchronous>, transform_indices = @transform_7, window_bounds = array<i64: 32, 32>}, {pipeline_mode = #tpu.pipeline_mode<synchronous>, transform_indices = @transform_8, window_bounds = array<i64: 1, 32>}, {transform_indices = @transform_9, window_bounds = array<i64: 1, 8, 32>}]} {
    %c0 = arith.constant 0 : index
    %c0_0 = arith.constant 0 : index
    %c0_1 = arith.constant 0 : index
    %0 = vector.load %arg1[%c0, %c0_0, %c0_1] : memref<1x8x32xf32, #tpu.memory_space<vmem>>, vector<1x8x32xf32>
    %1 = vector.shape_cast %0 : vector<1x8x32xf32> to vector<8x32xf32>
    %c0_2 = arith.constant 0 : index
    %c0_3 = arith.constant 0 : index
    %2 = vector.load %arg2[%c0_2, %c0_3] : memref<32x32xf32, #tpu.memory_space<vmem>>, vector<32x32xf32>
    %cst = arith.constant dense<0.000000e+00> : vector<8x32xf32>
    %3 = tpu.matmul %1, %2, %cst {dimension_numbers = #tpu.dot_dimension_numbers<[1], [0], [0], [1], [0, 0, 1, 1], [], []>} : vector<8x32xf32>, vector<32x32xf32>, vector<8x32xf32> -> vector<8x32xf32>
    %c0_4 = arith.constant 0 : index
    %c0_5 = arith.constant 0 : index
    %4 = vector.load %arg5[%c0_4, %c0_5] : memref<1x32xf32, #tpu.memory_space<vmem>>, vector<1x32xf32>
    %5 = vector.broadcast %4 : vector<1x32xf32> to vector<8x32xf32>
    %6 = arith.addf %3, %5 : vector<8x32xf32>
    %c0_6 = arith.constant 0 : index
    %c0_7 = arith.constant 0 : index
    %7 = vector.load %arg3[%c0_6, %c0_7] : memref<32x32xf32, #tpu.memory_space<vmem>>, vector<32x32xf32>
    %cst_8 = arith.constant dense<0.000000e+00> : vector<8x32xf32>
    %8 = tpu.matmul %1, %7, %cst_8 {dimension_numbers = #tpu.dot_dimension_numbers<[1], [0], [0], [1], [0, 0, 1, 1], [], []>} : vector<8x32xf32>, vector<32x32xf32>, vector<8x32xf32> -> vector<8x32xf32>
    %c0_9 = arith.constant 0 : index
    %c0_10 = arith.constant 0 : index
    %9 = vector.load %arg6[%c0_9, %c0_10] : memref<1x32xf32, #tpu.memory_space<vmem>>, vector<1x32xf32>
    %10 = vector.broadcast %9 : vector<1x32xf32> to vector<8x32xf32>
    %11 = arith.addf %8, %10 : vector<8x32xf32>
    %c0_11 = arith.constant 0 : index
    %c0_12 = arith.constant 0 : index
    %12 = vector.load %arg4[%c0_11, %c0_12] : memref<32x32xf32, #tpu.memory_space<vmem>>, vector<32x32xf32>
    %cst_13 = arith.constant dense<0.000000e+00> : vector<8x32xf32>
    %13 = tpu.matmul %1, %12, %cst_13 {dimension_numbers = #tpu.dot_dimension_numbers<[1], [0], [0], [1], [0, 0, 1, 1], [], []>} : vector<8x32xf32>, vector<32x32xf32>, vector<8x32xf32> -> vector<8x32xf32>
    %c0_14 = arith.constant 0 : index
    %c0_15 = arith.constant 0 : index
    %14 = vector.load %arg7[%c0_14, %c0_15] : memref<1x32xf32, #tpu.memory_space<vmem>>, vector<1x32xf32>
    %15 = vector.broadcast %14 : vector<1x32xf32> to vector<8x32xf32>
    %16 = arith.addf %13, %15 : vector<8x32xf32>
    %17 = vector.extract_strided_slice %6 {offsets = [0, 0], sizes = [8, 8], strides = [1, 1]} : vector<8x32xf32> to vector<8x8xf32>
    %18 = vector.shape_cast %17 : vector<8x8xf32> to vector<1x8x8xf32>
    %19 = vector.extract_strided_slice %11 {offsets = [0, 0], sizes = [8, 8], strides = [1, 1]} : vector<8x32xf32> to vector<8x8xf32>
    %20 = vector.shape_cast %19 : vector<8x8xf32> to vector<1x8x8xf32>
    %21 = vector.extract_strided_slice %16 {offsets = [0, 0], sizes = [8, 8], strides = [1, 1]} : vector<8x32xf32> to vector<8x8xf32>
    %22 = vector.shape_cast %21 : vector<8x8xf32> to vector<1x8x8xf32>
    "tpu.trace_start"() <{level = 10 : i32, message = "bqd,bkd->bqk"}> : () -> ()
    %cst_16 = arith.constant dense<0.000000e+00> : vector<1x8x8xf32>
    %23 = tpu.matmul %18, %20, %cst_16 {dimension_numbers = #tpu.dot_dimension_numbers<[2], [2], [1], [1], [0, 0, 0, 1, 1, 1], [0], [0]>} : vector<1x8x8xf32>, vector<1x8x8xf32>, vector<1x8x8xf32> -> vector<1x8x8xf32>
    "tpu.trace_stop"() : () -> ()
    %cst_17 = arith.constant dense<0xFF800000> : vector<1x8xf32>
    %24 = vector.multi_reduction <maximumf>, %23, %cst_17 [2] : vector<1x8x8xf32> to vector<1x8xf32>
    %25 = vector.shape_cast %24 : vector<1x8xf32> to vector<1x8x1xf32>
    %26 = vector.broadcast %25 : vector<1x8x1xf32> to vector<1x8x8xf32>
    %27 = arith.subf %23, %26 : vector<1x8x8xf32>
    %28 = math.exp %27 : vector<1x8x8xf32>
    %cst_18 = arith.constant dense<0.000000e+00> : vector<1x8xf32>
    %29 = vector.multi_reduction <add>, %28, %cst_18 [2] : vector<1x8x8xf32> to vector<1x8xf32>
    %30 = vector.shape_cast %29 : vector<1x8xf32> to vector<1x8x1xf32>
    "tpu.trace_start"() <{level = 10 : i32, message = "bqk,bkd->bqd"}> : () -> ()
    %cst_19 = arith.constant dense<0.000000e+00> : vector<1x8x8xf32>
    %31 = tpu.matmul %28, %22, %cst_19 {dimension_numbers = #tpu.dot_dimension_numbers<[2], [1], [1], [2], [0, 0, 0, 1, 1, 2], [0], [0]>} : vector<1x8x8xf32>, vector<1x8x8xf32>, vector<1x8x8xf32> -> vector<1x8x8xf32>
    "tpu.trace_stop"() : () -> ()
    %32 = tpu.reciprocal %30 {approx = true} : vector<1x8x1xf32> -> vector<1x8x1xf32>
    %33 = vector.broadcast %32 : vector<1x8x1xf32> to vector<1x8x8xf32>
    %34 = arith.mulf %31, %33 : vector<1x8x8xf32>
    %35 = vector.shape_cast %34 : vector<1x8x8xf32> to vector<8x8xf32>
    %36 = vector.extract_strided_slice %6 {offsets = [0, 8], sizes = [8, 8], strides = [1, 1]} : vector<8x32xf32> to vector<8x8xf32>
    %37 = vector.shape_cast %36 : vector<8x8xf32> to vector<1x8x8xf32>
    %38 = vector.extract_strided_slice %11 {offsets = [0, 8], sizes = [8, 8], strides = [1, 1]} : vector<8x32xf32> to vector<8x8xf32>
    %39 = vector.shape_cast %38 : vector<8x8xf32> to vector<1x8x8xf32>
    %40 = vector.extract_strided_slice %16 {offsets = [0, 8], sizes = [8, 8], strides = [1, 1]} : vector<8x32xf32> to vector<8x8xf32>
    %41 = vector.shape_cast %40 : vector<8x8xf32> to vector<1x8x8xf32>
    "tpu.trace_start"() <{level = 10 : i32, message = "bqd,bkd->bqk"}> : () -> ()
    %cst_20 = arith.constant dense<0.000000e+00> : vector<1x8x8xf32>
    %42 = tpu.matmul %37, %39, %cst_20 {dimension_numbers = #tpu.dot_dimension_numbers<[2], [2], [1], [1], [0, 0, 0, 1, 1, 1], [0], [0]>} : vector<1x8x8xf32>, vector<1x8x8xf32>, vector<1x8x8xf32> -> vector<1x8x8xf32>
    "tpu.trace_stop"() : () -> ()
    %cst_21 = arith.constant dense<0xFF800000> : vector<1x8xf32>
    %43 = vector.multi_reduction <maximumf>, %42, %cst_21 [2] : vector<1x8x8xf32> to vector<1x8xf32>
    %44 = vector.shape_cast %43 : vector<1x8xf32> to vector<1x8x1xf32>
    %45 = vector.broadcast %44 : vector<1x8x1xf32> to vector<1x8x8xf32>
    %46 = arith.subf %42, %45 : vector<1x8x8xf32>
    %47 = math.exp %46 : vector<1x8x8xf32>
    %cst_22 = arith.constant dense<0.000000e+00> : vector<1x8xf32>
    %48 = vector.multi_reduction <add>, %47, %cst_22 [2] : vector<1x8x8xf32> to vector<1x8xf32>
    %49 = vector.shape_cast %48 : vector<1x8xf32> to vector<1x8x1xf32>
    "tpu.trace_start"() <{level = 10 : i32, message = "bqk,bkd->bqd"}> : () -> ()
    %cst_23 = arith.constant dense<0.000000e+00> : vector<1x8x8xf32>
    %50 = tpu.matmul %47, %41, %cst_23 {dimension_numbers = #tpu.dot_dimension_numbers<[2], [1], [1], [2], [0, 0, 0, 1, 1, 2], [0], [0]>} : vector<1x8x8xf32>, vector<1x8x8xf32>, vector<1x8x8xf32> -> vector<1x8x8xf32>
    "tpu.trace_stop"() : () -> ()
    %51 = tpu.reciprocal %49 {approx = true} : vector<1x8x1xf32> -> vector<1x8x1xf32>
    %52 = vector.broadcast %51 : vector<1x8x1xf32> to vector<1x8x8xf32>
    %53 = arith.mulf %50, %52 : vector<1x8x8xf32>
    %54 = vector.shape_cast %53 : vector<1x8x8xf32> to vector<8x8xf32>
    %55 = vector.extract_strided_slice %6 {offsets = [0, 16], sizes = [8, 8], strides = [1, 1]} : vector<8x32xf32> to vector<8x8xf32>
    %56 = vector.shape_cast %55 : vector<8x8xf32> to vector<1x8x8xf32>
    %57 = vector.extract_strided_slice %11 {offsets = [0, 16], sizes = [8, 8], strides = [1, 1]} : vector<8x32xf32> to vector<8x8xf32>
    %58 = vector.shape_cast %57 : vector<8x8xf32> to vector<1x8x8xf32>
    %59 = vector.extract_strided_slice %16 {offsets = [0, 16], sizes = [8, 8], strides = [1, 1]} : vector<8x32xf32> to vector<8x8xf32>
    %60 = vector.shape_cast %59 : vector<8x8xf32> to vector<1x8x8xf32>
    "tpu.trace_start"() <{level = 10 : i32, message = "bqd,bkd->bqk"}> : () -> ()
    %cst_24 = arith.constant dense<0.000000e+00> : vector<1x8x8xf32>
    %61 = tpu.matmul %56, %58, %cst_24 {dimension_numbers = #tpu.dot_dimension_numbers<[2], [2], [1], [1], [0, 0, 0, 1, 1, 1], [0], [0]>} : vector<1x8x8xf32>, vector<1x8x8xf32>, vector<1x8x8xf32> -> vector<1x8x8xf32>
    "tpu.trace_stop"() : () -> ()
    %cst_25 = arith.constant dense<0xFF800000> : vector<1x8xf32>
    %62 = vector.multi_reduction <maximumf>, %61, %cst_25 [2] : vector<1x8x8xf32> to vector<1x8xf32>
    %63 = vector.shape_cast %62 : vector<1x8xf32> to vector<1x8x1xf32>
    %64 = vector.broadcast %63 : vector<1x8x1xf32> to vector<1x8x8xf32>
    %65 = arith.subf %61, %64 : vector<1x8x8xf32>
    %66 = math.exp %65 : vector<1x8x8xf32>
    %cst_26 = arith.constant dense<0.000000e+00> : vector<1x8xf32>
    %67 = vector.multi_reduction <add>, %66, %cst_26 [2] : vector<1x8x8xf32> to vector<1x8xf32>
    %68 = vector.shape_cast %67 : vector<1x8xf32> to vector<1x8x1xf32>
    "tpu.trace_start"() <{level = 10 : i32, message = "bqk,bkd->bqd"}> : () -> ()
    %cst_27 = arith.constant dense<0.000000e+00> : vector<1x8x8xf32>
    %69 = tpu.matmul %66, %60, %cst_27 {dimension_numbers = #tpu.dot_dimension_numbers<[2], [1], [1], [2], [0, 0, 0, 1, 1, 2], [0], [0]>} : vector<1x8x8xf32>, vector<1x8x8xf32>, vector<1x8x8xf32> -> vector<1x8x8xf32>
    "tpu.trace_stop"() : () -> ()
    %70 = tpu.reciprocal %68 {approx = true} : vector<1x8x1xf32> -> vector<1x8x1xf32>
    %71 = vector.broadcast %70 : vector<1x8x1xf32> to vector<1x8x8xf32>
    %72 = arith.mulf %69, %71 : vector<1x8x8xf32>
    %73 = vector.shape_cast %72 : vector<1x8x8xf32> to vector<8x8xf32>
    %74 = vector.extract_strided_slice %6 {offsets = [0, 24], sizes = [8, 8], strides = [1, 1]} : vector<8x32xf32> to vector<8x8xf32>
    %75 = vector.shape_cast %74 : vector<8x8xf32> to vector<1x8x8xf32>
    %76 = vector.extract_strided_slice %11 {offsets = [0, 24], sizes = [8, 8], strides = [1, 1]} : vector<8x32xf32> to vector<8x8xf32>
    %77 = vector.shape_cast %76 : vector<8x8xf32> to vector<1x8x8xf32>
    %78 = vector.extract_strided_slice %16 {offsets = [0, 24], sizes = [8, 8], strides = [1, 1]} : vector<8x32xf32> to vector<8x8xf32>
    %79 = vector.shape_cast %78 : vector<8x8xf32> to vector<1x8x8xf32>
    "tpu.trace_start"() <{level = 10 : i32, message = "bqd,bkd->bqk"}> : () -> ()
    %cst_28 = arith.constant dense<0.000000e+00> : vector<1x8x8xf32>
    %80 = tpu.matmul %75, %77, %cst_28 {dimension_numbers = #tpu.dot_dimension_numbers<[2], [2], [1], [1], [0, 0, 0, 1, 1, 1], [0], [0]>} : vector<1x8x8xf32>, vector<1x8x8xf32>, vector<1x8x8xf32> -> vector<1x8x8xf32>
    "tpu.trace_stop"() : () -> ()
    %cst_29 = arith.constant dense<0xFF800000> : vector<1x8xf32>
    %81 = vector.multi_reduction <maximumf>, %80, %cst_29 [2] : vector<1x8x8xf32> to vector<1x8xf32>
    %82 = vector.shape_cast %81 : vector<1x8xf32> to vector<1x8x1xf32>
    %83 = vector.broadcast %82 : vector<1x8x1xf32> to vector<1x8x8xf32>
    %84 = arith.subf %80, %83 : vector<1x8x8xf32>
    %85 = math.exp %84 : vector<1x8x8xf32>
    %cst_30 = arith.constant dense<0.000000e+00> : vector<1x8xf32>
    %86 = vector.multi_reduction <add>, %85, %cst_30 [2] : vector<1x8x8xf32> to vector<1x8xf32>
    %87 = vector.shape_cast %86 : vector<1x8xf32> to vector<1x8x1xf32>
    "tpu.trace_start"() <{level = 10 : i32, message = "bqk,bkd->bqd"}> : () -> ()
    %cst_31 = arith.constant dense<0.000000e+00> : vector<1x8x8xf32>
    %88 = tpu.matmul %85, %79, %cst_31 {dimension_numbers = #tpu.dot_dimension_numbers<[2], [1], [1], [2], [0, 0, 0, 1, 1, 2], [0], [0]>} : vector<1x8x8xf32>, vector<1x8x8xf32>, vector<1x8x8xf32> -> vector<1x8x8xf32>
    "tpu.trace_stop"() : () -> ()
    %89 = tpu.reciprocal %87 {approx = true} : vector<1x8x1xf32> -> vector<1x8x1xf32>
    %90 = vector.broadcast %89 : vector<1x8x1xf32> to vector<1x8x8xf32>
    %91 = arith.mulf %88, %90 : vector<1x8x8xf32>
    %92 = vector.shape_cast %91 : vector<1x8x8xf32> to vector<8x8xf32>
    %93 = tpu.concatenate %35, %54, %73, %92 in 1 : vector<8x8xf32>, vector<8x8xf32>, vector<8x8xf32>, vector<8x8xf32> -> vector<8x32xf32>
    %c0_32 = arith.constant 0 : index
    %c0_33 = arith.constant 0 : index
    %94 = vector.load %arg8[%c0_32, %c0_33] : memref<32x32xf32, #tpu.memory_space<vmem>>, vector<32x32xf32>
    %cst_34 = arith.constant dense<0.000000e+00> : vector<8x32xf32>
    %95 = tpu.matmul %93, %94, %cst_34 {dimension_numbers = #tpu.dot_dimension_numbers<[1], [0], [0], [1], [0, 0, 1, 1], [], []>} : vector<8x32xf32>, vector<32x32xf32>, vector<8x32xf32> -> vector<8x32xf32>
    %c0_35 = arith.constant 0 : index
    %c0_36 = arith.constant 0 : index
    %96 = vector.load %arg9[%c0_35, %c0_36] : memref<1x32xf32, #tpu.memory_space<vmem>>, vector<1x32xf32>
    %97 = vector.broadcast %96 : vector<1x32xf32> to vector<8x32xf32>
    %98 = arith.addf %95, %97 : vector<8x32xf32>
    %99 = vector.shape_cast %98 : vector<8x32xf32> to vector<1x8x32xf32>
    %c0_37 = arith.constant 0 : index
    %c0_38 = arith.constant 0 : index
    %c0_39 = arith.constant 0 : index
    %100 = vector.load %arg10[%c0_37, %c0_38, %c0_39] : memref<1x8x32xf32, #tpu.memory_space<vmem>>, vector<1x8x32xf32>
    tpu.vector_store %arg10[%c0_37, %c0_38, %c0_39], %99 {strides = array<i32>} : memref<1x8x32xf32, #tpu.memory_space<vmem>>, vector<1x8x32xf32>,
    return
  }
  func.func @transform_0(%arg0: i32) -> (i32, i32, i32) {
    %c0_i32 = arith.constant 0 : i32
    %c0_i32_0 = arith.constant 0 : i32
    %c0_i32_1 = arith.constant 0 : i32
    return %arg0, %c0_i32, %c0_i32_0 : i32, i32, i32
  }
  func.func @transform_1(%arg0: i32) -> (i32, i32) {
    %c0_i32 = arith.constant 0 : i32
    %c0_i32_0 = arith.constant 0 : i32
    %c0_i32_1 = arith.constant 0 : i32
    return %c0_i32, %c0_i32_0 : i32, i32
  }
  func.func @transform_2(%arg0: i32) -> (i32, i32) {
    %c0_i32 = arith.constant 0 : i32
    %c0_i32_0 = arith.constant 0 : i32
    %c0_i32_1 = arith.constant 0 : i32
    return %c0_i32, %c0_i32_0 : i32, i32
  }
  func.func @transform_3(%arg0: i32) -> (i32, i32) {
    %c0_i32 = arith.constant 0 : i32
    %c0_i32_0 = arith.constant 0 : i32
    %c0_i32_1 = arith.constant 0 : i32
    return %c0_i32, %c0_i32_0 : i32, i32
  }
  func.func @transform_4(%arg0: i32) -> (i32, i32) {
    %c0_i32 = arith.constant 0 : i32
    %c0_i32_0 = arith.constant 0 : i32
    %c0_i32_1 = arith.constant 0 : i32
    return %c0_i32, %c0_i32_0 : i32, i32
  }
  func.func @transform_5(%arg0: i32) -> (i32, i32) {
    %c0_i32 = arith.constant 0 : i32
    %c0_i32_0 = arith.constant 0 : i32
    %c0_i32_1 = arith.constant 0 : i32
    return %c0_i32, %c0_i32_0 : i32, i32
  }
  func.func @transform_6(%arg0: i32) -> (i32, i32) {
    %c0_i32 = arith.constant 0 : i32
    %c0_i32_0 = arith.constant 0 : i32
    %c0_i32_1 = arith.constant 0 : i32
    return %c0_i32, %c0_i32_0 : i32, i32
  }
  func.func @transform_7(%arg0: i32) -> (i32, i32) {
    %c0_i32 = arith.constant 0 : i32
    %c0_i32_0 = arith.constant 0 : i32
    %c0_i32_1 = arith.constant 0 : i32
    return %c0_i32, %c0_i32_0 : i32, i32
  }
  func.func @transform_8(%arg0: i32) -> (i32, i32) {
    %c0_i32 = arith.constant 0 : i32
    %c0_i32_0 = arith.constant 0 : i32
    %c0_i32_1 = arith.constant 0 : i32
    return %c0_i32, %c0_i32_0 : i32, i32
  }
  func.func @transform_9(%arg0: i32) -> (i32, i32, i32) {
    %c0_i32 = arith.constant 0 : i32
    %c0_i32_0 = arith.constant 0 : i32
    %c0_i32_1 = arith.constant 0 : i32
    return %arg0, %c0_i32, %c0_i32_0 : i32, i32, i32
  }
}

</mosaic_0001>

<bundles_post_ra>
// kernel: tpu_custom_call.1
= control target key start
LH: loop header
LB: loop body
LE: loop exit
PB: predicated region body
PF: predicated region fallthrough
CT: control target
= control target key end

     0   :  { %s2504_s0 = inlined_call_operand.hbm [shape: f32[2,8,32], index: 0, kind: input, shape index: {}]   ;;  %s2505_s1 = inlined_call_operand.hbm [shape: f32[32,32], index: 1, kind: input, shape index: {}]   ;;  %s2506_s2 = inlined_call_operand.hbm [shape: f32[32,32], index: 2, kind: input, shape index: {}]   ;;  %s2507_s3 = inlined_call_operand.hbm [shape: f32[32,32], index: 3, kind: input, shape index: {}]   ;;  %s2508_s4 = inlined_call_operand.vmem [shape: f32[1,32], index: 4, kind: input, shape index: {}]   ;;  %s2509_s5 = inlined_call_operand.vmem [shape: f32[1,32], index: 5, kind: input, shape index: {}]   ;;  %s2510_s6 = inlined_call_operand.vmem [shape: f32[1,32], index: 6, kind: input, shape index: {}]   ;;  %s2511_s7 = inlined_call_operand.hbm [shape: f32[32,32], index: 7, kind: input, shape index: {}]   ;;  %s2512_s8 = inlined_call_operand.vmem [shape: f32[1,32], index: 8, kind: input, shape index: {}]   ;;  %s2513_s9 = inlined_call_operand.hbm [shape: f32[2,8,32], index: 9, kind: output, shape index: {}]  }
   0x1   :  { %2518 = sst [smem:[#allocation16_spill]] %s2505_s1 }
   0x2   :  { %2519 = sst [smem:[#allocation17_spill]] %s2513_s9 }
   0x3   :  { %14 = vsyncpa [#allocation3], 0 }
   0x4   :  { %16 = vsyncpa [#allocation3 + $0x1], 0 }
   0x5   :  { %17 = vsyncpa [#allocation6], 0 }
   0x6   :  { %18 = vsyncpa [#allocation9], 0 }
   0x7   :  { %19 = vsyncpa [#allocation4], 0 }
   0x8   :  { %21 = vsyncpa [#allocation4 + $0x1], 0  ;;  %s2118_s30 = smov 0   ;;  %s2120_s10 = smov 0  }
   0x9   :  { %s2122_s11 = smov 0   ;;  %s2124_s12 = smov 0  }
   0xa LB: > { %s2051_s13 = smov [#allocation5]   ;;  %s2139_s15 = sadd.s32 4294967295, %s2049_s12   ;;  %s2049_s12 = sphi %s2124_s12, %s2542_s12   ;;  %s2045_s11 = sphi %s2122_s11, %s2541_s11   ;;  %s2041_s10 = sphi %s2120_s10, %s2540_s10   ;;  %s2037_s30 = sphi %s2118_s30, %s2539_s30  }
   0xb   : > { %s264_s14 = sshll.u32 %s2051_s13, 4  ;;  %p1536_p0 = scmp.ge.s32.totalorder %s2049_s12, 1  ;;  %s2144_s14 = int_to_ptr.vmem [resolvable:$true] %s264_s14 }
   0xc   : > { %p2515_p1 = scmp.eq.s32.totalorder %s2139_s15, 0  ;;  %p252_p2 = scmp.lt.s32.totalorder %s2049_s12, 3 }
   0xd   : > { %s2052_s17 = smov [#allocation8]   ;;  %s2053_s20 = smov [#allocation7]  }
   0xe   : > { %p2146_p3 = pnand %p1536_p0, %p252_p2  ;;  %s290_s18 = sshll.u32 %s2052_s17, 4  ;;  %s2159_s18 = int_to_ptr.vmem [resolvable:$true] %s290_s18 }
   0xf   : > { %s277_s21 = sshll.u32 %s2053_s20, 4  ;;  %s2522_s1 = sld [smem:[#allocation16_spill]]  ;;  %s2161_s21 = int_to_ptr.vmem [resolvable:$true] %s277_s21 }
  0x10   : > { %s2520_s16 = scalar_select %p2146_p3, 1, 0 }
  0x11   : > { %p1739_p5 = pneg %p2146_p3 }
  0x13   : > { %p2155_p6 = pnand %p1739_p5, %p2515_p1 }
  0x15   : > { %s1833_s24 = scalar_lea.hbm %s2522_s1, 512  ;;  %p2171_p8 = pneg %p2155_p6 }
  0x16   : > { %p1834_p7 = scmp.ne.s32.totalorder %s2522_s1, %s1833_s24  ;;  %p1840_p11 = scmp.lt.u32.totalorder %s1833_s24, %s2522_s1 }
  0x18   : > { %p1836_p9 = pnand %p2171_p8, %p1834_p7 }
  0x1a   : > { %p1837_p10 = pneg %p1836_p9 }
  0x1c   : > { %p1842_p12 = pnand %p1840_p11, %p1837_p10 }
  0x1e   : > { %1845 = shalt.err (!%p1842_p12)
}
  0x1f   : > { %s1846_s13 = scalar_lea.vmem %s2144_s14, 512  ;;  %p1854_p5 = scmp.lt.s32.totalorder %s2144_s14, %s2144_s14 }
  0x20   : > { %p1847_p13 = scmp.ne.s32.totalorder %s2144_s14, %s1846_s13  ;;  %p1855_p4 = scmp.lt.s32.totalorder %s1846_s13, %s1846_s13 }
  0x22   : > { %p1849_p0 = pnand %p1847_p13, %p2171_p8  ;;  %p1856_p7 = por %p1855_p4, %p1854_p5 }
  0x24   : > { %p1850_p2 = pneg %p1849_p0 }
  0x26   : > { %p1857_p9 = pnand %p1856_p7, %p1850_p2 }
  0x28   : > { %1860 = shalt.err (!%p1857_p9)
}
  0x29   : > { %s2054_s17 = smov 128   ;;  %s2055_s20 = smov 8  }
  0x2a   : > { %1742 = dma.hbm_to_vmem [thread:$0]  (!%p2155_p6), %s2522_s1, 512, %s2144_s14, [#allocation6], %s2054_s17, %s2054_s17, %s2055_s20  }
  0x2b   : > { %s1861_s26 = scalar_lea.hbm %s2507_s3, 512 }
  0x2c   : > { %p1862_p4 = scmp.ne.s32.totalorder %s2507_s3, %s1861_s26  ;;  %p1868_p12 = scmp.lt.u32.totalorder %s1861_s26, %s2507_s3 }
  0x2e   : > { %p1864_p10 = pnand %p1862_p4, %p2171_p8 }
  0x30   : > { %p1865_p11 = pneg %p1864_p10 }
  0x32   : > { %p1870_p13 = pnand %p1868_p12, %p1865_p11 }
  0x34   : > { %1873 = shalt.err (!%p1870_p13)
}
  0x35   : > { %s1874_s14 = scalar_lea.vmem %s2159_s18, 512  ;;  %p1882_p7 = scmp.lt.s32.totalorder %s2159_s18, %s2159_s18 }
  0x36   : > { %p1875_p0 = scmp.ne.s32.totalorder %s2159_s18, %s1874_s14  ;;  %p1883_p9 = scmp.lt.s32.totalorder %s1874_s14, %s1874_s14 }
  0x38   : > { %p1877_p2 = pnand %p1875_p0, %p2171_p8  ;;  %p1884_p4 = por %p1883_p9, %p1882_p7 }
  0x3a   : > { %p1878_p5 = pneg %p1877_p2 }
  0x3c   : > { %p1885_p10 = pnand %p1884_p4, %p1878_p5 }
  0x3e   : > { %1888 = shalt.err (!%p1885_p10)
}
  0x3f   : > { %1748 = dma.hbm_to_vmem [thread:$0]  (!%p2155_p6), %s2507_s3, 512, %s2159_s18, [#allocation9], %s2054_s17, %s2054_s17, %s2055_s20  }
  0x40   : > { %s1889_s25 = scalar_lea.hbm %s2506_s2, 512 }
  0x41   : > { %p1890_p11 = scmp.ne.s32.totalorder %s2506_s2, %s1889_s25  ;;  %p1896_p0 = scmp.lt.u32.totalorder %s1889_s25, %s2506_s2 }
  0x43   : > { %p1892_p12 = pnand %p1890_p11, %p2171_p8 }
  0x45   : > { %p1893_p13 = pneg %p1892_p12 }
  0x47   : > { %p1898_p2 = pnand %p1896_p0, %p1893_p13 }
  0x49   : > { %1901 = shalt.err (!%p1898_p2)
}
  0x4a   : > { %s1902_s18 = scalar_lea.vmem %s2161_s21, 512  ;;  %p1910_p4 = scmp.lt.s32.totalorder %s2161_s21, %s2161_s21 }
  0x4b   : > { %p1903_p5 = scmp.ne.s32.totalorder %s2161_s21, %s1902_s18  ;;  %p1911_p10 = scmp.lt.s32.totalorder %s1902_s18, %s1902_s18 }
  0x4d   : > { %p1905_p7 = pnand %p1903_p5, %p2171_p8  ;;  %p1912_p11 = por %p1911_p10, %p1910_p4 }
  0x4f   : > { %p1906_p9 = pneg %p1905_p7 }
  0x51   : > { %p1913_p12 = pnand %p1912_p11, %p1906_p9 }
  0x53   : > { %1916 = shalt.err (!%p1913_p12)
}
  0x54   : > { %1745 = dma.hbm_to_vmem [thread:$0]  (!%p2155_p6), %s2506_s2, 512, %s2161_s21, [#allocation6], %s2054_s17, %s2054_s17, %s2055_s20  }
  0x55   : > { %s2056_s22 = smov [#allocation10]   ;;  %s1917_s26 = scalar_lea.hbm %s2511_s7, 512 }
  0x56   : > { %s312_s23 = sshll.u32 %s2056_s22, 4  ;;  %p1918_p13 = scmp.ne.s32.totalorder %s2511_s7, %s1917_s26  ;;  %s313_s23 = int_to_ptr.vmem [resolvable:$true] %s312_s23 }
  0x57   : > { %p1924_p5 = scmp.lt.u32.totalorder %s1917_s26, %s2511_s7 }
  0x58   : > { %p1920_p0 = pnand %p1918_p13, %p2171_p8 }
  0x5a   : > { %p1921_p2 = pneg %p1920_p0 }
  0x5c   : > { %p1926_p7 = pnand %p1924_p5, %p1921_p2 }
  0x5e   : > { %1929 = shalt.err (!%p1926_p7)
}
  0x5f   : > { %s1930_s21 = scalar_lea.vmem %s313_s23, 512  ;;  %p1938_p11 = scmp.lt.s32.totalorder %s313_s23, %s313_s23 }
  0x60   : > { %p1931_p9 = scmp.ne.s32.totalorder %s313_s23, %s1930_s21  ;;  %p1939_p12 = scmp.lt.s32.totalorder %s1930_s21, %s1930_s21 }
  0x62   : > { %p1933_p4 = pnand %p1931_p9, %p2171_p8  ;;  %p1940_p1 = por %p1939_p12, %p1938_p11 }
  0x64   : > { %p1934_p10 = pneg %p1933_p4 }
  0x66   : > { %p1941_p3 = pnand %p1940_p1, %p1934_p10 }
  0x68   : > { %1944 = shalt.err (!%p1941_p3)
}
  0x69   : > { %1751 = dma.hbm_to_vmem [thread:$0]  (!%p2155_p6), %s2511_s7, 512, %s313_s23, [#allocation9], %s2054_s17, %s2054_s17, %s2055_s20  }
  0x6a   : > { %s1535_s19 = sadd.s32 4294967294, %s2049_s12   ;;  %s2270_s27 = sadd.s32 1, %s2049_s12  }
  0x6b   : > { %s31_s22 = ssub.s32 %s2049_s12, %s2270_s27  ;;  %s34_s24 = sadd.s32 1, %s2045_s11 }
  0x6c   : > { %p32_p1 = scmp.eq.s32.totalorder %s31_s22, 0  ;;  %p41_p3 = scmp.ne.s32.totalorder %s2045_s11, %s2041_s10 }
  0x6d   : > { %p42_p8 = scmp.eq.s32.totalorder %s2049_s12, 0  ;;  %p47_p13 = scmp.ne.s32.totalorder %s2041_s10, %s2037_s30 }
  0x6e   : > { %s2281_s25 = scalar_select %p32_p1, %s2045_s11, %s34_s24  }
  0x6f   : > { %p2283_p0 = por %p42_p8, %p41_p3  ;;  %p2525_p2 = scmp.eq.s32.totalorder %s2139_s15, 0 }
  0x70   : > { %p239_p5 = scmp.eq.s32.totalorder %s2139_s15, 1  ;;  %p245_p7 = scmp.eq.s32.totalorder %s1535_s19, 1 }
  0x71   : > { %p2289_p6 = por %p2525_p2, %p47_p13  ;;  %p1764_p9 = scmp.lt.s32.totalorder %s2049_s12, 2 }
  0x72   : > { %s329_s20 = sand.u32 1, %s2045_s11   ;;  %p2296_p4 = por %p239_p5, %p41_p3 }
  0x73   : > { %p2300_p10 = por %p245_p7, %p47_p13  ;;  %s1542_s29 = sshll.u32 %s329_s20, 3 }
  0x74   : > { %s2527_s23 = scalar_select %p2296_p4, 1, 0 }
  0x75   : > { %s2528_s28 = scalar_select %p2300_p10, 1, 0 }
  0x76   : > { %s1543_s13 = sshll.u32 %s2049_s12, 7  ;;  %s333_s9 = scalar_lea.vmem [#allocation2], %s1542_s29 }
  0x77   : > { %s2308_s14 = scalar_lea.hbm %s2504_s0, %s1543_s13  ;;  %s340_s19 = sshll.u32 %s333_s9, 4  ;;  %s2310_s19 = int_to_ptr.vmem [resolvable:$true] %s340_s19 }
  0x78   : > { %p2314_p11 = pnand %p1764_p9, %p2283_p0  ;;  %s330_s24 = scalar_lea.sflag [#allocation3], %s329_s20 }
  0x79   : > { %s1945_s1 = scalar_lea.hbm %s2308_s14, 128  ;;  %s1950_s18 = scalar_lea.hbm %s2504_s0, 256 }
  0x7a   : > { %p1946_p12 = scmp.ne.s32.totalorder %s2308_s14, %s1945_s1  ;;  %p1947_p1 = pneg %p2314_p11 }
  0x7b   : > { %p1951_p13 = scmp.lt.u32.totalorder %s2308_s14, %s2504_s0  ;;  %p1952_p0 = scmp.lt.u32.totalorder %s1950_s18, %s1945_s1 }
  0x7c   : > { %p1948_p3 = pnand %p1947_p1, %p1946_p12  ;;  %p1954_p5 = scmp.lt.u32.totalorder %s1945_s1, %s2308_s14 }
  0x7d   : > { %p1953_p2 = por %p1952_p0, %p1951_p13 }
  0x7e   : > { %p1949_p8 = pneg %p1948_p3 }
  0x7f   : > { %p1955_p7 = por %p1954_p5, %p1953_p2 }
  0x81   : > { %p1956_p9 = pnand %p1955_p7, %p1949_p8 }
  0x83   : > { %1959 = shalt.err (!%p1956_p9)
}
  0x84   : > { %s1960_s20 = scalar_lea.vmem %s2310_s19, 128  ;;  %s2057_s9 = smov [#allocation2]  }
  0x85   : > { %p1961_p12 = scmp.ne.s32.totalorder %s2310_s19, %s1960_s20  ;;  %s1965_s29 = sshll.u32 %s2057_s9, 4  ;;  %s1966_s29 = int_to_ptr.vmem [resolvable:$false] %s1965_s29 }
  0x86   : > { %s1967_s13 = scalar_lea.vmem %s1966_s29, 256  ;;  %p1968_p4 = scmp.lt.s32.totalorder %s2310_s19, %s1966_s29 }
  0x87   : > { %p1963_p3 = pnand %p1961_p12, %p1947_p1  ;;  %p1969_p13 = scmp.lt.s32.totalorder %s1967_s13, %s1960_s20 }
  0x89   : > { %p1964_p10 = pneg %p1963_p3  ;;  %p1970_p0 = por %p1969_p13, %p1968_p4 }
  0x8b   : > { %p1971_p2 = pnand %p1970_p0, %p1964_p10 }
  0x8d   : > { %1974 = shalt.err (!%p1971_p2)
}
  0x8e   : > { %1755 = dma.hbm_to_vmem [thread:$0]  (!%p2314_p11), %s2308_s14, 128, %s2310_s19, %s330_s24  }
  0x8f   : > { %p2530_p8 = scmp.ne.s32.totalorder %s2520_s16, 0 }
  0x90   : > { %s2346_s1 = sand.u32 (!%p2530_p8), 1, %s2041_s10  }
  0x91   : > { %349 = sbr.rel (%p2530_p8) target bundleno = 1697 (0x6a1), region = 56  ;;  %s1545_s18 = sshll.u32 (!%p2530_p8), %s2346_s1, 3 }
  0x92   : > { %s352_s26 = scalar_lea.sflag (!%p2530_p8), [#allocation3], %s2346_s1  ;;  %s2352_s21 = scalar_lea.vmem (!%p2530_p8), [#allocation2], %s1545_s18 }
  0x98   : > { %2020 = dma.done.wait (%p2289_p6), %s352_s26, 128  }
  0x99   : > { %2022 = vsyncadd (%p2289_p6), %s352_s26, 4294967168  ;;  %p2531_p4 = scmp.eq.s32.totalorder %s2139_s15, 0 }
  0x9b   : > { %2024 = dma.done.wait (%p2531_p4), [#allocation6], 1024   ;;  %p2532_p10 = pmov %p2531_p4 }
  0x9c   : > { %p2533_p11 = pmov %p2531_p4 }
  0x9d   : > { %2026 = vsyncadd (%p2532_p10), [#allocation6], 4294966272 }
  0x9e   : > { %2028 = dma.done.wait (%p2533_p11), [#allocation9], 1024   ;;  %p2534_p1 = pmov %p2531_p4 }
  0x9f   : > { %v2058_v0 = vmov 0.0|0.0   ;;  %vm2059_vm0 = vmmov 0   ;;  %v2060_v1 = vmov 0.0   ;;  %v407_v2 = vld [vmem:[#allocation5] sm:$0xff]  ;;  %v408_v3 = vld [vmem:[#allocation5 + $0x8] sm:$0xff]  ;;  %v409_v7 = vld [vmem:[#allocation5 + $0x10] sm:$0xff] }
  0xa0   : > { %2030 = vsyncadd (%p2534_p1), [#allocation9], 4294966272  ;;  %1695 = vmatprep.subr.bf16.mxu0 %v2058_v0  ;;  %1701 = vmatprep.subr.bf16.mxu1 %v2058_v0  ;;  %v492_v4 = vld [vmem:[#allocation7] sm:$0xff]  ;;  %v1696_v5 = vpack.c.bf16 %v408_v3, %v407_v2  ;;  %v493_v6 = vld [vmem:[#allocation7 + $0x8] sm:$0xff]  ;;  %vm418_vm1 = vcmask 261120   ;;  %vm654_vm2 = vcmask 64512  }
  0xa1   : > { %1619 = vmatprep.mubr.msk.f32.mxu0 %vm2059_vm0, %v2060_v1  ;;  %1630 = vmatprep.mubr.msk.f32.mxu1 %vm2059_vm0, %v2060_v1  ;;  %v410_v8 = vld [vmem:[#allocation5 + $0x18] sm:$0xff]  ;;  %v1702_v9 = vpack.c.bf16 %v493_v6, %v492_v4  ;;  %v494_v10 = vld [vmem:[#allocation7 + $0x10] sm:$0xff]  ;;  %v573_v15 = vld [vmem:[#allocation8] sm:$0xff]  ;;  %s2061_s22 = smov 120   ;;  %s2062_s24 = smov 112   ;;  %vm1324_vm3 = vcmask 130048  }
  0xa2   : > { %v495_v11 = vld [vmem:[#allocation7 + $0x18] sm:$0xff]  ;;  %1697 = vmatpush3.bf16.msra.mxu0 %v1696_v5  ;;  %v1699_v12 = vpack.c.bf16 %v410_v8, %v409_v7  ;;  %v574_v16 = vld [vmem:[#allocation8 + $0x8] sm:$0xff]  ;;  %v575_v17 = vld [vmem:[#allocation8 + $0x10] sm:$0xff]  ;;  %s2063_s20 = smov 104   ;;  %s2064_s13 = smov 8   ;;  %vm1326_vm4 = vcmask 195584  }
  0xa3   : > { %1703 = vmatpush3.bf16.msra.mxu1 %v1702_v9  ;;  %1698 = vmatprep.subr.bf16.mxu0 %v2058_v0  ;;  %v1705_v13 = vpack.c.bf16 %v495_v11, %v494_v10  ;;  %v406_v14 = vld [vmem:[%s2352_s21] sm:$0xff]  ;;  %v1708_v18 = vpack.c.bf16 %v574_v16, %v573_v15  ;;  %v1328_v15 = vld [vmem:[#allocation10] sm:$0xff]  ;;  %v1329_v16 = vld [vmem:[#allocation10 + $0x8] sm:$0xff]  ;;  %s2065_s26 = smov 16   ;;  %s2066_s21 = smov 24  }
  0xa4   : > { %1704 = vmatprep.subr.bf16.mxu1 %v2058_v0  ;;  %v576_v19 = vld [vmem:[#allocation8 + $0x18] sm:$0xff]  ;;  %v1551_v21 = vld [vmem:[%s2508_s4] ss:$0 sm:$0xff]  ;;  %s1572_s14 = sshll.u32 %s2139_s15, 7  ;;  %s405_s19 = scalar_lea.vmem [#allocation11], %s1545_s18 }
  0xa5   : > { %v1711_v20 = vpack.c.bf16 %v576_v19, %v575_v17  ;;  %v1553_v22 = vld [vmem:[%s2509_s5] ss:$0 sm:$0xff]  ;;  %s2535_s9 = sld [smem:[#allocation17_spill]]  ;;  %p2536_p5 = scmp.ne.s32.totalorder %s2527_s23, 0 }
  0xa6   : > { %1700 = vmatpush3.bf16.msra.mxu0 %v1699_v12  ;;  %v1555_v29 = vld [vmem:[%s2510_s6] ss:$0 sm:$0xff]  ;;  %s2067_s18 = smov [#allocation11]  }
  0xa7   : > { %1706 = vmatpush3.bf16.msra.mxu1 %v1705_v13  ;;  %1707 = vmatprep.subr.bf16.mxu0 %v2058_v0  ;;  %v1330_v19 = vld [vmem:[#allocation10 + $0x10] sm:$0xff] }
  0xa8   : > { %1644 = vmatprep.subr.mxu1 %v2060_v1 }
  0xa9   : > { %1620 = vmatmul.mubr.msk.f32.vlgmr.msra.gmra.mrb[0].mxu0 %vm418_vm1, %v406_v14 }
  0xaa   : > { %1631 = vmatmul.mubr.msk.f32.vlgmr.msra.gmra.mrb[0].mxu1 %vm418_vm1, %v406_v14  ;;  %1641 = vmatprep.mubr.msk.f32.mxu0 %vm2059_vm0, %v2060_v1 }
  0xab   : > { %1646 = vmatprep.mubr.msk.f32.mxu1 %vm2059_vm0, %v2060_v1  ;;  %1709 = vmatpush3.bf16.msra.mxu0 %v1708_v18  ;;  %v1714_v18 = vpack.c.bf16 %v1329_v16, %v1328_v15  ;;  %s2459_s29 = scalar_lea.hbm %s2535_s9, %s1572_s14 }
  0xac   : > { %1710 = vmatprep.subr.bf16.mxu0 %v2058_v0 }
  0xaf   : > { %1712 = vmatpush3.bf16.msra.mxu0 %v1711_v20  ;;  %v1331_v20 = vld [vmem:[#allocation10 + $0x18] sm:$0xff] }
  0xb0   : > { %1664 = vmatprep.subr.mxu0 %v2060_v1 }
  0xb2   : > { %1642 = vmatmul.mubr.msk.f32.vlgmr.msra.gmra.mrb[2].mxu0 %vm418_vm1, %v406_v14 }
  0xb3   : > { %1666 = vmatprep.mubr.msk.f32.mxu0 %vm2059_vm0, %v2060_v1 }
 0x17c   : > { %v488_v23 = vpop.f32.mrb[0].mxu0 }
 0x17d   : > { %v489_v24 = vadd.f32 %v1551_v21, %v488_v23  ;;  %v569_v25 = vpop.f32.mrb[0].mxu1  ;;  %v1621_v26 = vpop.f32.mrb[1].mxu0 }
 0x17e   : > { %v570_v27 = vadd.f32 %v1553_v22, %v569_v25  ;;  %v1632_v28 = vpop.f32.mrb[1].mxu1  ;;  %v1717_v22 = vpack.c.bf16 %v1331_v20, %v1330_v19 }
 0x17f   : > { %815 = vrot.lane.b32.xlu1 %v489_v24, %s2061_s22 }
 0x180   : > { %1645 = vmatpush3.xpose.msk.msra.mxu1 %vm654_vm2, %v570_v27 }
 0x181   : > { %1649 = vmatprep.subr.mxu1 %v2060_v1 }
 0x183   : > { %1647 = vmatmul.mubr.msk.f32.vlgmr.msra.gmra.mrb[2].mxu1 %vm654_vm2, %v489_v24  ;;  %983 = vrot.lane.b32.xlu1 %v570_v27, %s2062_s24 }
 0x184   : > { %1651 = vmatprep.mubr.msk.f32.mxu1 %vm2059_vm0, %v2060_v1 }
 0x185   : > { %v650_v30 = vpop.f32.mrb[2].mxu0 }
 0x186   : > { %v651_v31 = vadd.f32 %v1555_v29, %v650_v30  ;;  %v1643_v32 = vpop.f32.mrb[3].mxu0 }
 0x187   : > { %981 = vrot.lane.b32.xlu1 %v489_v24, %s2062_s24 }
 0x188   : > { %1650 = vmatpush3.msra.mxu1 %v651_v31 }
 0x189   : > { %1654 = vmatprep.subr.mxu1 %v2060_v1 }
 0x18b   : > { %1148 = vrot.lane.b32.xlu1 %v570_v27, %s2063_s20 }
 0x18f   : > { %1146 = vrot.lane.b32.xlu1 %v489_v24, %s2063_s20 }
 0x193   : > { %1068 = vrot.lane.b32.xlu1 %v651_v31, %s2062_s24 }
 0x1f1   : > { %v816_v33 = vpop.permute.xlu1 %815 }
 0x1f5   : > { %v984_v34 = vpop.permute.xlu1 %983 }
 0x1f6   : > { %1665 = vmatpush3.xpose.msk.msra.mxu0 %vm654_vm2, %v984_v34 }
 0x1f7   : > { %1674 = vmatprep.subr.mxu0 %v2060_v1 }
 0x1f9   : > { %v982_v35 = vpop.permute.xlu1 %981 }
 0x1fa   : > { %1667 = vmatmul.mubr.msk.f32.vlgmr.msra.gmra.mrb[4].mxu0 %vm654_vm2, %v982_v35 }
 0x1fb   : > { %1676 = vmatprep.mubr.msk.f32.mxu0 %vm2059_vm0, %v2060_v1 }
 0x1fd   : > { %v1149_v36 = vpop.permute.xlu1 %1148 }
 0x1fe   : > { %1675 = vmatpush3.xpose.msk.msra.mxu0 %vm654_vm2, %v1149_v36 }
 0x1ff   : > { %1713 = vmatprep.subr.bf16.mxu0 %v2058_v0 }
 0x201   : > { %v1147_v37 = vpop.permute.xlu1 %1146 }
 0x202   : > { %1677 = vmatmul.mubr.msk.f32.vlgmr.msra.gmra.mrb[6].mxu0 %vm654_vm2, %v1147_v37 }
 0x203   : > { %1692 = vmatprep.mubr.msk.f32.mxu0 %vm2059_vm0, %v2060_v1  ;;  %1715 = vmatpush3.bf16.msra.mxu0 %v1714_v18 }
 0x204   : > { %1716 = vmatprep.subr.bf16.mxu0 %v2058_v0 }
 0x205   : > { %v1069_v63 = vpop.permute.xlu1 %1068 }
 0x207   : > { %1718 = vmatpush3.bf16.msra.mxu0 %v1717_v22 }
 0x256   : > { %v727_v38 = vpop.f32.mrb[2].mxu1 }
 0x257   : > { %v1648_v39 = vpop.f32.mrb[3].mxu1  ;;  %v731_v40 = vsel %vm654_vm2, %v727_v38, -inf }
 0x258   : > { %732 = vmax.xlane.f32.xlu0 %v731_v40 }
 0x26e   : > { %817 = vrot.lane.b32.xlu0 %v570_v27, %s2061_s22 }
 0x2cd   : > { %v1055_v41 = vpop.f32.mrb[4].mxu0 }
 0x2ce   : > { %v1668_v42 = vpop.f32.mrb[5].mxu0  ;;  %v1059_v43 = vsel %vm654_vm2, %v1055_v41, -inf }
 0x2cf   : > { %1060 = vmax.xlane.f32.xlu0 %v1059_v43  ;;  %v1569_v42 = vld [vmem:[%s2512_s8] ss:$0 sm:$0xff] }
 0x2d5   : > { %v1220_v44 = vpop.f32.mrb[6].mxu0 }
 0x2d6   : > { %v1678_v45 = vpop.f32.mrb[7].mxu0  ;;  %v1224_v46 = vsel %vm654_vm2, %v1220_v44, -inf }
 0x2d7   : > { %1225 = vmax.xlane.f32.xlu1 %v1224_v46 }
 0x2e5   : > { %v733_v47 = vpop.xlane.xlu0 %732  ;;  %903 = vrot.lane.b32.xlu0 %v651_v31, %s2061_s22  ;;  %s1427_s22 = sshll.u32 %s405_s19, 4  ;;  %s2461_s22 = int_to_ptr.vmem [resolvable:$true] %s1427_s22 }
 0x2e6   : > { %v734_v48 = vsub.f32 %v727_v38, %v733_v47  ;;  %s1975_s15 = scalar_lea.vmem %s2461_s22, 128 }
 0x2e7   : > { %p1976_p6 = scmp.ne.s32.totalorder %s2461_s22, %s1975_s15 }
 0x2e8   : > { %v735_v49 = vmul.f32 1.442695, %v734_v48 }
 0x2e9   : > { %v818_v51 = vpop.permute.xlu0 %817  ;;  %p1977_p7 = pnand %p1976_p6, %p2536_p5 }
 0x2ea   : > { %1817 = vpow2.f32 %v735_v49 }
 0x2eb   : > { %p1978_p9 = pneg %p1977_p7 }
 0x2f4   : > { %v1818_v50 = vpop.eup %1817 }
 0x2f5   : > { %1652 = vmatmul.mubr.msk.f32.vlgmr.msra.gmra.mrb[4].mxu1 %vm654_vm2, %v1818_v50  ;;  %v737_v13 = vsel %vm654_vm2, %v1818_v50, 0.0 }
 0x2f6   : > { %1655 = vmatpush3.xpose.msk.msra.mxu1 %vm654_vm2, %v818_v51  ;;  %1656 = vmatprep.mubr.msk.f32.mxu1 %vm2059_vm0, %v2060_v1 }
 0x2f7   : > { %1659 = vmatprep.subr.mxu1 %v2060_v1 }
 0x2f9   : > { %1657 = vmatmul.mubr.msk.f32.vlgmr.msra.gmra.mrb[6].mxu1 %vm654_vm2, %v816_v33 }
 0x2fa   : > { %1661 = vmatprep.mubr.msk.f32.mxu1 %vm2059_vm0, %v2060_v1 }
 0x35c   : > { %v1061_v52 = vpop.xlane.xlu0 %1060 }
 0x35d   : > { %v1062_v53 = vsub.f32 %v1055_v41, %v1061_v52 }
 0x35f   : > { %v1063_v60 = vmul.f32 1.442695, %v1062_v53 }
 0x360   : > { %v904_v54 = vpop.permute.xlu0 %903 }
 0x361   : > { %1660 = vmatpush3.msra.mxu1 %v904_v54  ;;  %1819 = vpow2.f32 %v1063_v60 }
 0x362   : > { %1669 = vmatprep.subr.mxu1 %v2060_v1 }
 0x364   : > { %v1226_v2 = vpop.xlane.xlu1 %1225 }
 0x365   : > { %v1227_v3 = vsub.f32 %v1220_v44, %v1226_v2 }
 0x367   : > { %v1228_v6 = vmul.f32 1.442695, %v1227_v3 }
 0x36b   : > { %v1820_v61 = vpop.eup %1819 }
 0x36c   : > { %v1065_v62 = vsel %vm654_vm2, %v1820_v61, 0.0 }
 0x3c8   : > { %v2430_v55 = vpop.f32.mrb[4].mxu1 }
 0x3c9   : > { %v1653_v56 = vpop.f32.mrb[5].mxu1 }
 0x3cc   : > { %v889_v57 = vpop.f32.mrb[6].mxu1 }
 0x3cd   : > { %v1658_v58 = vpop.f32.mrb[7].mxu1  ;;  %v893_v59 = vsel %vm654_vm2, %v889_v57, -inf }
 0x3ce   : > { %894 = vmax.xlane.f32.xlu1 %v893_v59 }
 0x3df   : > { %1233 = vrot.lane.b32.xlu1 %v651_v31, %s2063_s20 }
 0x403   : > { %1066 = vadd.xlane.f32.xlu1 %v1065_v62 }
 0x45b   : > { %v895_v4 = vpop.xlane.xlu1 %894 }
 0x45c   : > { %v896_v5 = vsub.f32 %v889_v57, %v895_v4 }
 0x45e   : > { %v897_v7 = vmul.f32 1.442695, %v896_v5 }
 0x45f   : > { %v1234_v11 = vpop.permute.xlu1 %1233 }
 0x460   : > { %1821 = vpow2.f32 %v897_v7 }
 0x461   : > { %1823 = vpow2.f32 %v1228_v6 }
 0x46a   : > { %v1822_v8 = vpop.eup %1821 }
 0x46b   : > { %1662 = vmatmul.mubr.msk.f32.vlgmr.msra.gmra.mrb[8].mxu1 %vm654_vm2, %v1822_v8  ;;  %v899_v9 = vsel %vm654_vm2, %v1822_v8, 0.0  ;;  %v1824_v10 = vpop.eup %1823 }
 0x46c   : > { %1670 = vmatpush3.msra.mxu1 %v1069_v63  ;;  %900 = vadd.xlane.f32.xlu0 %v899_v9  ;;  %v1230_v12 = vsel %vm654_vm2, %v1824_v10, 0.0 }
 0x46d   : > { %1671 = vmatprep.mubr.msk.f32.mxu1 %vm2059_vm0, %v2060_v1  ;;  %1679 = vmatprep.subr.mxu1 %v2060_v1 }
 0x46f   : > { %1672 = vmatmul.mubr.msk.f32.vlgmr.msra.gmra.mrb[10].mxu1 %vm654_vm2, %v1820_v61 }
 0x470   : > { %1680 = vmatpush3.msra.mxu1 %v1234_v11  ;;  %1231 = vadd.xlane.f32.xlu0 %v1230_v12 }
 0x471   : > { %1681 = vmatprep.mubr.msk.f32.mxu1 %vm2059_vm0, %v2060_v1 }
 0x473   : > { %1682 = vmatmul.mubr.msk.f32.vlgmr.msra.gmra.mrb[12].mxu1 %vm654_vm2, %v1824_v10 }
 0x474   : > { %738 = vadd.xlane.f32.xlu0 %v737_v13 }
 0x490   : > { %v1067_v17 = vpop.xlane.xlu1 %1066 }
 0x4f9   : > { %v901_v14 = vpop.xlane.xlu0 %900 }
 0x4fa   : > { %1825 = vrcp.f32 %v901_v14 }
 0x4fb   : > { %1827 = vrcp.f32 %v1067_v17 }
 0x4fd   : > { %v1232_v21 = vpop.xlane.xlu0 %1231 }
 0x4fe   : > { %1829 = vrcp.f32 %v1232_v21 }
 0x501   : > { %v739_v33 = vpop.xlane.xlu0 %738 }
 0x502   : > { %1831 = vrcp.f32 %v739_v33 }
 0x504   : > { %v1826_v1 = vpop.eup %1825 }
 0x505   : > { %v1828_v26 = vpop.eup %1827 }
 0x508   : > { %v1830_v30 = vpop.eup %1829 }
 0x50c   : > { %v1832_v34 = vpop.eup %1831 }
 0x50d   : > { %v814_v36 = vmul.f32 %v1832_v34, %v2430_v55 }
 0x53e   : > { %v975_v23 = vpop.f32.mrb[8].mxu1 }
 0x53f   : > { %v980_v24 = vmul.f32 %v1826_v1, %v975_v23  ;;  %v1663_v25 = vpop.f32.mrb[9].mxu1 }
 0x541   : > { %1312 = vrot.lane.b32.xlu1 %v980_v24, %s2064_s13  ;;  %s1414_s13 = scalar_lea.sflag [#allocation4], %s2346_s1 }
 0x542   : > { %v1140_v27 = vpop.f32.mrb[10].mxu1 }
 0x543   : > { %v1145_v28 = vmul.f32 %v1828_v26, %v1140_v27  ;;  %v1673_v29 = vpop.f32.mrb[11].mxu1 }
 0x545   : > { %1316 = vrot.lane.b32.xlu0 %v1145_v28, %s2065_s26  ;;  %s1979_s26 = sshll.u32 %s2067_s18, 4  ;;  %s1980_s26 = int_to_ptr.vmem [resolvable:$false] %s1979_s26 }
 0x546   : > { %v1305_v0 = vpop.f32.mrb[12].mxu1  ;;  %p1982_p12 = scmp.lt.s32.totalorder %s2461_s22, %s1980_s26 }
 0x547   : > { %v1310_v31 = vmul.f32 %v1830_v30, %v1305_v0  ;;  %v1683_v32 = vpop.f32.mrb[13].mxu1 }
 0x549   : > { %1320 = vrot.lane.b32.xlu1 %v1310_v31, %s2066_s21  ;;  %s1981_s21 = scalar_lea.vmem %s1980_s26, 256 }
 0x54a   : > { %p1983_p3 = scmp.lt.s32.totalorder %s1981_s21, %s1975_s15 }
 0x54c   : > { %p1984_p13 = por %p1983_p3, %p1982_p12 }
 0x54e   : > { %p1985_p0 = pnand %p1984_p13, %p1978_p9 }
 0x5b3   : > { %v1313_v35 = vpop.permute.xlu1 %1312 }
 0x5b4   : > { %v1323_v38 = vsel %vm654_vm2, %v814_v36, %v1313_v35 }
 0x5b7   : > { %v1317_v37 = vpop.permute.xlu0 %1316 }
 0x5b8   : > { %v1325_v39 = vsel %vm1324_vm3, %v1323_v38, %v1317_v37 }
 0x5bb   : > { %v1321_v40 = vpop.permute.xlu1 %1320 }
 0x5bc   : > { %v1327_v41 = vsel %vm1326_vm4, %v1325_v39, %v1321_v40 }
 0x5bd   : > { %1693 = vmatmul.mubr.msk.f32.vlgmr.msra.gmra.mrb[8].mxu0 %vm418_vm1, %v1327_v41 }
 0x690   : > { %v1408_v43 = vpop.f32.mrb[8].mxu0 }
 0x691   : > { %v1409_v44 = vadd.f32 %v1569_v42, %v1408_v43  ;;  %v1694_v45 = vpop.f32.mrb[9].mxu0 }
 0x693   : > { %1412 = vst.msk [vmem:[%s405_s19] sm:$0xff] %vm418_vm1, %v1409_v44 }
 0x694   : > { %1988 = shalt.err (!%p1985_p0)
}
 0x695   : > { %s1989_s1 = scalar_lea.hbm %s2459_s29, 128  ;;  %s1993_s14 = scalar_lea.hbm %s2535_s9, 256 }
 0x696   : > { %p1990_p2 = scmp.ne.s32.totalorder %s2459_s29, %s1989_s1  ;;  %p1994_p10 = scmp.lt.u32.totalorder %s2459_s29, %s2535_s9 }
 0x697   : > { %p1995_p11 = scmp.lt.u32.totalorder %s1993_s14, %s1989_s1  ;;  %p1997_p6 = scmp.lt.u32.totalorder %s1989_s1, %s2459_s29 }
 0x698   : > { %p1991_p8 = pnand %p1990_p2, %p2536_p5 }
 0x699   : > { %p1996_p1 = por %p1995_p11, %p1994_p10 }
 0x69a   : > { %p1992_p4 = pneg %p1991_p8 }
 0x69b   : > { %p1998_p7 = por %p1997_p6, %p1996_p1 }
 0x69d   : > { %p1999_p9 = pnand %p1998_p7, %p1992_p4 }
 0x69f   : > { %2002 = shalt.err (!%p1999_p9)
}
 0x6a0   : > { %1737 = dma.vmem_to_hbm [thread:$0]  (%p2536_p5), %s2461_s22, 128, %s2459_s29, %s1414_s13  }
 0x6a1 PF: > { %s1439_s20 = sand.u32 1, %s2037_s30   ;;  %p2537_p12 = scmp.ne.s32.totalorder %s2528_s28, 0 }
 0x6a2   : > { %p2538_p3 = scmp.ge.s32.totalorder %s2049_s12, 2  ;;  %s1440_s15 = scalar_lea.sflag [#allocation4], %s1439_s20 }
 0x6a4   : > { %p1757_p13 = pnand %p2538_p3, %p2537_p12 }
 0x6a6   : > { %2032 = dma.done.wait (!%p1757_p13), %s1440_s15, 128  }
 0x6a7   : > { %2034 = vsyncadd (!%p1757_p13), %s1440_s15, 4294967168  ;;  %p24_p0 = scmp.ge.s32.totalorder %s2270_s27, 4   ;;  %s2539_s30 = smov %s2041_s10 }
 0x6a8   : > { %s2540_s10 = smov %s2045_s11  ;;  %s2541_s11 = smov %s2281_s25 }
 0x6a9   : > { %s2542_s12 = smov %s2270_s27  ;;  %26 = sbr.rel (!%p24_p0) target bundleno = 10 (0xa), region = 117 }
 0x6b0   :  { %1445 = vsyncpa [#allocation3], 1 }
 0x6b1   :  { %1447 = vsyncpa [#allocation3 + $0x1], 1 }
 0x6b2   :  { %1448 = vsyncpa [#allocation6], 1 }
 0x6b3   :  { %1449 = vsyncpa [#allocation9], 1 }
 0x6b4   :  { %1450 = vsyncpa [#allocation4], 1 }
 0x6b5   :  { %1452 = vsyncpa [#allocation4 + $0x1], 1 }

</bundles_post_ra>
